<compile_context>
chip_gen: v5e
topology: v5e:2x2
jax: 0.10.0
libtpu: 0.0.40
codegen_flags: <defaults>
</compile_context>

<pallas_src>
import jax
import jax.numpy as jnp
from jax.experimental import pallas as pl
from jax.experimental.pallas import tpu as pltpu


def _round_up(x, m):
    return ((x + m - 1) // m) * m


# ----------------------------- fused kernel ---------------------------------
def _make_fused_kernel(layer_dims, order, zoom, pan, lo, hi):
    """layer_dims: tuple of (I_real, Kp, Op) per layer (compile-time constants)."""
    n_layers = len(layer_dims)

    def kernel(*refs):
        x_ref = refs[0]
        w_refs = refs[1:1 + n_layers]
        o_ref = refs[1 + n_layers]

        act = x_ref[...].astype(jnp.float32)              # (TB, Ip0), lane-dense
        for (i_real, kp, op), w_ref in zip(layer_dims, w_refs):
            x_l = act[:, :i_real]                         # drop zero padding lanes
            t = jnp.tanh(x_l) * zoom + pan                # EUP slot (free-ish)
            xa = t - lo
            xb = hi - t

            # Ascending powers of xa (static unroll, VPU).
            xa_pows = [jnp.ones_like(xa)]
            for _ in range(order):
                xa_pows.append(xa_pows[-1] * xa)

            # Descending powers of xb via a running product: each basis term
            # ber_k = xa^k * xb^(order-k) is finished immediately, keeping the
            # extra live set to one running (TB, I) array.
            terms = [None] * (order + 1)
            xb_pow = jnp.ones_like(xb)
            for k in range(order, -1, -1):
                terms[k] = xa_pows[k] * xb_pow
                if k > 0:
                    xb_pow = xb_pow * xb

            pad = kp - (order + 1) * i_real
            if pad:
                terms.append(jnp.zeros((act.shape[0], pad), jnp.float32))

            # Basis slab (TB, Kp): f32 compute, one cast to bf16 for the MXU.
            ber = jnp.concatenate(terms, axis=-1).astype(jnp.bfloat16)

            # One MXU matmul per layer: bf16 operands, f32 accumulation.
            act = jnp.dot(ber, w_ref[...], preferred_element_type=jnp.float32)

        o_ref[...] = act.astype(o_ref.dtype)              # (TB, Op_last), lane-dense

    return kernel


# --------------------------- params & folding --------------------------------
def init_bernstein_kan_params(key, layer_sizes, order):
    """Matches the torch module's parameters:
       per layer: weights (O, I) ~ N(0,1), coefficients (O, I, order+1) ~ 0.1*N(0,1).
       Also precomputes the folded, padded, bf16 kernel weight (Kp, Op)."""
    params = []
    for i in range(1, len(layer_sizes)):
        in_sz, out_sz = layer_sizes[i - 1], layer_sizes[i]
        key, kw, kc = jax.random.split(key, 3)
        weights = jax.random.normal(kw, (out_sz, in_sz), jnp.float32)
        coeffs = 0.1 * jax.random.normal(kc, (out_sz, in_sz, order + 1), jnp.float32)

        k_real = (order + 1) * in_sz
        kp = _round_up(k_real, 128)       # contraction dim padded to 128 multiple
        op = _round_up(out_sz, 128)       # output dim padded -> lane-dense stores
        # Wfold[k*I + i, j] = weights[j, i] * coeffs[j, i, k]
        folded = jnp.einsum("ji,jik->kij", weights, coeffs).reshape(k_real, out_sz)
        w_fold = jnp.zeros((kp, op), jnp.float32).at[:k_real, :out_sz].set(folded)

        params.append({
            "weights": weights,
            "coeffs": coeffs,
            "w_fold": w_fold.astype(jnp.bfloat16),   # bf16 weights in HBM
            "in_size": in_sz,
            "out_size": out_sz,
            "kp": kp,
            "op": op,
        })
    return params


# ------------------------------ forward --------------------------------------
def bernstein_kan_forward(params, x, *, order, lo, hi, block_b=256):
    """Whole-network forward in one pallas_call (batch-tiled grid)."""
    B, in0 = x.shape
    assert in0 == params[0]["in_size"]
    zoom = (hi - lo) / 2.0
    pan = (hi + lo) / 2.0

    ip0 = _round_up(in0, 128)             # lane-dense input tile
    op_last = params[-1]["op"]
    out_real = params[-1]["out_size"]

    tb = min(block_b, _round_up(B, 8))    # batch tile (multiple of 8 sublanes)
    bp = _round_up(B, tb)

    x_p = jnp.zeros((bp, ip0), jnp.float32).at[:B, :in0].set(x.astype(jnp.float32))

    layer_dims = tuple((p["in_size"], p["kp"], p["op"]) for p in params)
    kernel = _make_fused_kernel(layer_dims, order, zoom, pan, lo, hi)

    in_specs = [pl.BlockSpec((tb, ip0), lambda b: (b, 0))]
    for p in params:
        # Constant index_map -> folded weights stay resident in VMEM across
        # every batch grid step (single DMA, no per-tile re-fetch).
        in_specs.append(pl.BlockSpec((p["kp"], p["op"]), lambda b: (0, 0)))
    out_specs = pl.BlockSpec((tb, op_last), lambda b: (b, 0))

    flops = 2 * bp * sum(p["kp"] * p["op"] for p in params)
    transcendentals = bp * sum(p["in_size"] for p in params)
    bytes_accessed = (x_p.size * 4 + bp * op_last * 4
                      + sum(p["kp"] * p["op"] * 2 for p in params))

    out = pl.pallas_call(
        kernel,
        out_shape=jax.ShapeDtypeStruct((bp, op_last), jnp.float32),
        grid=(bp // tb,),
        in_specs=in_specs,
        out_specs=out_specs,
        compiler_params=pltpu.CompilerParams(
            dimension_semantics=("parallel",),
            vmem_limit_bytes=32 * 1024 * 1024,
        ),
        cost_estimate=pl.CostEstimate(
            flops=flops,
            transcendentals=transcendentals,
            bytes_accessed=bytes_accessed,
        ),
    )(x_p, *[p["w_fold"] for p in params])

    return out[:B, :out_real]


# --------------------- pure-JAX references (for checking) --------------------
def _bernstein_basis(x, *, order, lo, hi):
    # Mirrors torch's precompute_bernstein (cumulative-product powers).
    zoom = (hi - lo) / 2.0
    pan = (hi + lo) / 2.0
    t = jnp.tanh(x) * zoom + pan
    xa = t - lo
    xb = hi - t
    xa_n = [jnp.ones_like(xa)]
    xb_n = [jnp.ones_like(xb)]
    for _ in range(order):
        xa_n.append(xa_n[-1] * xa)
        xb_n.append(xb_n[-1] * xb)
    # ber[b, i, k] = xa^k * xb^(order-k)
    return jnp.stack([xa_n[k] * xb_n[order - k] for k in range(order + 1)], axis=2)


def bernstein_kan_reference_f32(params, x, *, order, lo, hi):
    """All-f32 mirror of the PyTorch module, op-for-op."""
    for p in params:
        ber = _bernstein_basis(x, order=order, lo=lo, hi=hi)        # (B, I, order+1)
        transformed = jnp.einsum("jik,bik->bji", p["coeffs"], ber)   # (B, O, I)
        x = jnp.einsum("bji,ji->bj", transformed, p["weights"])
    return x


def bernstein_kan_reference_bf16(params, x, *, order, lo, hi):
    """Same math as the kernel (bf16 MXU operands, f32 accumulate)."""
    for p in params:
        ber = _bernstein_basis(x, order=order, lo=lo, hi=hi)         # (B, I, order+1)
        B, I, _ = ber.shape
        slab = jnp.transpose(ber, (0, 2, 1)).reshape(B, (order + 1) * I)  # col = k*I+i
        wf = p["w_fold"][:(order + 1) * I, :p["out_size"]]            # bf16, unpadded view
        x = jnp.dot(slab.astype(jnp.bfloat16), wf,
                    preferred_element_type=jnp.float32)
    return x


# ----------------------------------- main ------------------------------------
if __name__ == "__main__":
    layer_sizes = [16, 32, 8]
    order = 5
    lo, hi = 0.0, 1.0
    batch = 8

    key = jax.random.PRNGKey(0)
    key, kx = jax.random.split(key)
    x = jax.random.normal(kx, (batch, layer_sizes[0]), jnp.float32)

    params = init_bernstein_kan_params(key, layer_sizes, order)

    out = bernstein_kan_forward(params, x, order=order, lo=lo, hi=hi)
    out = jax.block_until_ready(out)
    assert out.shape == (batch, layer_sizes[-1])

    # Tight check vs. a reference using the identical bf16-operand matmul math
    # (isolates kernel/layout bugs from bf16 operand quantization).
    ref_bf16 = bernstein_kan_reference_bf16(params, x, order=order, lo=lo, hi=hi)
    err_tight = float(jnp.max(jnp.abs(out - ref_bf16)))
    assert jnp.allclose(out, ref_bf16, atol=2e-3, rtol=2e-3), (
        f"bf16-reference mismatch: max abs err {err_tight}"
    )

    # Sanity check vs. the all-f32 torch-equivalent reference; tolerance is
    # looser only because the MXU operands are bf16 (f32 accumulation).
    ref_f32 = bernstein_kan_reference_f32(params, x, order=order, lo=lo, hi=hi)
    err = float(jnp.max(jnp.abs(out - ref_f32)))
    assert jnp.allclose(out, ref_f32, atol=3e-2, rtol=3e-2), (
        f"f32-reference mismatch: max abs err {err}"
    )

    print("KERNEL_OK")
</pallas_src>

<mosaic_0001>
module attributes {stable_mosaic.version = 11 : i64} {
  func.func @kernel(%arg0: i32, %arg1: memref<8x128xf32, #tpu.memory_space<vmem>>, %arg2: memref<128x128xbf16, #tpu.memory_space<vmem>>, %arg3: memref<256x128xbf16, #tpu.memory_space<vmem>>, %arg4: memref<8x128xf32, #tpu.memory_space<vmem>>) attributes {dimension_semantics = [#tpu.dimension_semantics<parallel>], iteration_bounds = array<i64: 1>, scalar_prefetch = 0 : i64, scratch_operands = 0 : i64, tpu.core_type = #tpu.core_type<tc>, window_params = [{transform_indices = @transform_0, window_bounds = array<i64: 8, 128>}, {pipeline_mode = #tpu.pipeline_mode<synchronous>, transform_indices = @transform_1, window_bounds = array<i64: 128, 128>}, {pipeline_mode = #tpu.pipeline_mode<synchronous>, transform_indices = @transform_2, window_bounds = array<i64: 256, 128>}, {transform_indices = @transform_3, window_bounds = array<i64: 8, 128>}]} {
    %c0 = arith.constant 0 : index
    %c0_0 = arith.constant 0 : index
    %0 = vector.load %arg1[%c0, %c0_0] : memref<8x128xf32, #tpu.memory_space<vmem>>, vector<8x128xf32>
    %1 = vector.extract_strided_slice %0 {offsets = [0, 0], sizes = [8, 16], strides = [1, 1]} : vector<8x128xf32> to vector<8x16xf32>
    %2 = math.tanh %1 : vector<8x16xf32>
    %cst = arith.constant 5.000000e-01 : f32
    %3 = vector.broadcast %cst : f32 to vector<8x16xf32>
    %4 = arith.mulf %2, %3 : vector<8x16xf32>
    %cst_1 = arith.constant 5.000000e-01 : f32
    %5 = vector.broadcast %cst_1 : f32 to vector<8x16xf32>
    %6 = arith.addf %4, %5 : vector<8x16xf32>
    %cst_2 = arith.constant 0.000000e+00 : f32
    %7 = vector.broadcast %cst_2 : f32 to vector<8x16xf32>
    %8 = arith.subf %6, %7 : vector<8x16xf32>
    %cst_3 = arith.constant 1.000000e+00 : f32
    %9 = vector.broadcast %cst_3 : f32 to vector<8x16xf32>
    %10 = arith.subf %9, %6 : vector<8x16xf32>
    %cst_4 = arith.constant 1.000000e+00 : f32
    %11 = vector.broadcast %cst_4 : f32 to vector<8x16xf32>
    %12 = arith.mulf %11, %8 : vector<8x16xf32>
    %13 = arith.mulf %12, %8 : vector<8x16xf32>
    %14 = arith.mulf %13, %8 : vector<8x16xf32>
    %15 = arith.mulf %14, %8 : vector<8x16xf32>
    %16 = arith.mulf %15, %8 : vector<8x16xf32>
    %cst_5 = arith.constant 1.000000e+00 : f32
    %17 = vector.broadcast %cst_5 : f32 to vector<8x16xf32>
    %18 = arith.mulf %16, %17 : vector<8x16xf32>
    %19 = arith.mulf %17, %10 : vector<8x16xf32>
    %20 = arith.mulf %15, %19 : vector<8x16xf32>
    %21 = arith.mulf %19, %10 : vector<8x16xf32>
    %22 = arith.mulf %14, %21 : vector<8x16xf32>
    %23 = arith.mulf %21, %10 : vector<8x16xf32>
    %24 = arith.mulf %13, %23 : vector<8x16xf32>
    %25 = arith.mulf %23, %10 : vector<8x16xf32>
    %26 = arith.mulf %12, %25 : vector<8x16xf32>
    %27 = arith.mulf %25, %10 : vector<8x16xf32>
    %28 = arith.mulf %11, %27 : vector<8x16xf32>
    %cst_6 = arith.constant 0.000000e+00 : f32
    %29 = vector.broadcast %cst_6 : f32 to vector<8x32xf32>
    %30 = tpu.concatenate %28, %26, %24, %22, %20, %18, %29 in 1 : vector<8x16xf32>, vector<8x16xf32>, vector<8x16xf32>, vector<8x16xf32>, vector<8x16xf32>, vector<8x16xf32>, vector<8x32xf32> -> vector<8x128xf32>
    %31 = arith.truncf %30 : vector<8x128xf32> to vector<8x128xbf16>
    %c0_7 = arith.constant 0 : index
    %c0_8 = arith.constant 0 : index
    %32 = vector.load %arg2[%c0_7, %c0_8] : memref<128x128xbf16, #tpu.memory_space<vmem>>, vector<128x128xbf16>
    %cst_9 = arith.constant dense<0.000000e+00> : vector<8x128xf32>
    %33 = tpu.matmul %31, %32, %cst_9 {dimension_numbers = #tpu.dot_dimension_numbers<[1], [0], [0], [1], [0, 0, 1, 1], [], []>} : vector<8x128xbf16>, vector<128x128xbf16>, vector<8x128xf32> -> vector<8x128xf32>
    %34 = vector.extract_strided_slice %33 {offsets = [0, 0], sizes = [8, 32], strides = [1, 1]} : vector<8x128xf32> to vector<8x32xf32>
    %35 = math.tanh %34 : vector<8x32xf32>
    %cst_10 = arith.constant 5.000000e-01 : f32
    %36 = vector.broadcast %cst_10 : f32 to vector<8x32xf32>
    %37 = arith.mulf %35, %36 : vector<8x32xf32>
    %cst_11 = arith.constant 5.000000e-01 : f32
    %38 = vector.broadcast %cst_11 : f32 to vector<8x32xf32>
    %39 = arith.addf %37, %38 : vector<8x32xf32>
    %cst_12 = arith.constant 0.000000e+00 : f32
    %40 = vector.broadcast %cst_12 : f32 to vector<8x32xf32>
    %41 = arith.subf %39, %40 : vector<8x32xf32>
    %cst_13 = arith.constant 1.000000e+00 : f32
    %42 = vector.broadcast %cst_13 : f32 to vector<8x32xf32>
    %43 = arith.subf %42, %39 : vector<8x32xf32>
    %cst_14 = arith.constant 1.000000e+00 : f32
    %44 = vector.broadcast %cst_14 : f32 to vector<8x32xf32>
    %45 = arith.mulf %44, %41 : vector<8x32xf32>
    %46 = arith.mulf %45, %41 : vector<8x32xf32>
    %47 = arith.mulf %46, %41 : vector<8x32xf32>
    %48 = arith.mulf %47, %41 : vector<8x32xf32>
    %49 = arith.mulf %48, %41 : vector<8x32xf32>
    %cst_15 = arith.constant 1.000000e+00 : f32
    %50 = vector.broadcast %cst_15 : f32 to vector<8x32xf32>
    %51 = arith.mulf %49, %50 : vector<8x32xf32>
    %52 = arith.mulf %50, %43 : vector<8x32xf32>
    %53 = arith.mulf %48, %52 : vector<8x32xf32>
    %54 = arith.mulf %52, %43 : vector<8x32xf32>
    %55 = arith.mulf %47, %54 : vector<8x32xf32>
    %56 = arith.mulf %54, %43 : vector<8x32xf32>
    %57 = arith.mulf %46, %56 : vector<8x32xf32>
    %58 = arith.mulf %56, %43 : vector<8x32xf32>
    %59 = arith.mulf %45, %58 : vector<8x32xf32>
    %60 = arith.mulf %58, %43 : vector<8x32xf32>
    %61 = arith.mulf %44, %60 : vector<8x32xf32>
    %cst_16 = arith.constant 0.000000e+00 : f32
    %62 = vector.broadcast %cst_16 : f32 to vector<8x64xf32>
    %63 = tpu.concatenate %61, %59, %57, %55, %53, %51, %62 in 1 : vector<8x32xf32>, vector<8x32xf32>, vector<8x32xf32>, vector<8x32xf32>, vector<8x32xf32>, vector<8x32xf32>, vector<8x64xf32> -> vector<8x256xf32>
    %64 = arith.truncf %63 : vector<8x256xf32> to vector<8x256xbf16>
    %c0_17 = arith.constant 0 : index
    %c0_18 = arith.constant 0 : index
    %65 = vector.load %arg3[%c0_17, %c0_18] : memref<256x128xbf16, #tpu.memory_space<vmem>>, vector<256x128xbf16>
    %cst_19 = arith.constant dense<0.000000e+00> : vector<8x128xf32>
    %66 = tpu.matmul %64, %65, %cst_19 {dimension_numbers = #tpu.dot_dimension_numbers<[1], [0], [0], [1], [0, 0, 1, 1], [], []>} : vector<8x256xbf16>, vector<256x128xbf16>, vector<8x128xf32> -> vector<8x128xf32>
    %c0_20 = arith.constant 0 : index
    %c0_21 = arith.constant 0 : index
    %67 = vector.load %arg4[%c0_20, %c0_21] : memref<8x128xf32, #tpu.memory_space<vmem>>, vector<8x128xf32>
    tpu.vector_store %arg4[%c0_20, %c0_21], %66 {strides = array<i32>} : memref<8x128xf32, #tpu.memory_space<vmem>>, vector<8x128xf32>,
    return
  }
  func.func @transform_0(%arg0: i32) -> (i32, i32) {
    %c0_i32 = arith.constant 0 : i32
    %c0_i32_0 = arith.constant 0 : i32
    return %arg0, %c0_i32 : i32, i32
  }
  func.func @transform_1(%arg0: i32) -> (i32, i32) {
    %c0_i32 = arith.constant 0 : i32
    %c0_i32_0 = arith.constant 0 : i32
    %c0_i32_1 = arith.constant 0 : i32
    return %c0_i32, %c0_i32_0 : i32, i32
  }
  func.func @transform_2(%arg0: i32) -> (i32, i32) {
    %c0_i32 = arith.constant 0 : i32
    %c0_i32_0 = arith.constant 0 : i32
    %c0_i32_1 = arith.constant 0 : i32
    return %c0_i32, %c0_i32_0 : i32, i32
  }
  func.func @transform_3(%arg0: i32) -> (i32, i32) {
    %c0_i32 = arith.constant 0 : i32
    %c0_i32_0 = arith.constant 0 : i32
    return %arg0, %c0_i32 : i32, i32
  }
}

</mosaic_0001>

<bundles_post_ra>
// kernel: tpu_custom_call.1
= control target key start
LH: loop header
LB: loop body
LE: loop exit
PB: predicated region body
PF: predicated region fallthrough
CT: control target
= control target key end

     0   :  { %8 = vsyncpa [#allocation3], 0  ;;  %s708_s0 = inlined_call_operand.hbm [shape: f32[8,128], index: 0, kind: input, shape index: {}]   ;;  %s709_s1 = inlined_call_operand.hbm [shape: bf16[128,128], index: 1, kind: input, shape index: {}]   ;;  %s710_s2 = inlined_call_operand.hbm [shape: bf16[256,128], index: 2, kind: input, shape index: {}]   ;;  %s711_s3 = inlined_call_operand.hbm [shape: f32[8,128], index: 3, kind: output, shape index: {}]  }
   0x1   :  { %9 = vsyncpa [#allocation6], 0  ;;  %s26_s14 = sshll.u32 %s709_s1, 4  ;;  %s27_s14 = int_to_ptr.hbm [resolvable:$true] %s26_s14 }
   0x2   :  { %10 = vsyncpa [#allocation4], 0  ;;  %s647_s15 = smov [#allocation5]   ;;  %s16_s19 = sshll.u32 %s708_s0, 4  ;;  %s17_s19 = int_to_ptr.hbm [resolvable:$true] %s16_s19 }
   0x3   :  { %s28_s16 = sshll.u32 %s647_s15, 4  ;;  %s648_s20 = smov 64   ;;  %s29_s16 = int_to_ptr.vmem [resolvable:$true] %s28_s16 }
   0x4   :  { %s649_s21 = smov 4   ;;  %s650_s22 = smov [#allocation2]  }
   0x5   :  { %34 = dma.hbm_to_vmem [thread:$0]  %s27_s14, 1024, %s29_s16, [#allocation6], %s648_s20, %s648_s20, %s649_s21  }
   0x6   :  { %s18_s23 = sshll.u32 %s650_s22, 4  ;;  %s39_s1 = sshll.u32 %s710_s2, 4  ;;  %s19_s23 = int_to_ptr.vmem [resolvable:$true] %s18_s23  ;;  %s40_s1 = int_to_ptr.hbm [resolvable:$true] %s39_s1 }
   0x7   :  { %21 = dma.hbm_to_vmem [thread:$0]  %s17_s19, 128, %s19_s23, [#allocation3]  }
   0x8   :  { %s651_s26 = smov [#allocation7]  }
   0x9   :  { %s41_s27 = sshll.u32 %s651_s26, 4  ;;  %s42_s27 = int_to_ptr.vmem [resolvable:$true] %s41_s27 }
   0xa   :  { %47 = dma.hbm_to_vmem [thread:$0]  %s40_s1, 2048, %s42_s27, [#allocation6], %s648_s20, %s648_s20, %s649_s21  }
   0xb   :  { %641 = dma.done.wait [#allocation3], 128  }
   0xc   :  { %642 = vsyncadd [#allocation3], 4294967168 }
   0xd   :  { %643 = dma.done.wait [#allocation6], 3072  }
   0xe   :  { %644 = vsyncadd [#allocation6], 4294964224  ;;  %v60_v0 = vld [vmem:[#allocation2] sm:$0xff]  ;;  %v507_v2 = vld [vmem:[#allocation5 + $0x30] sm:$0xff]  ;;  %s652_s0 = smov 48   ;;  %s653_s2 = smov 80  }
   0xf   :  { %v508_v1 = vld [vmem:[#allocation5 + $0x38] sm:$0xff]  ;;  %541 = vtanh.f32 %v60_v0  ;;  %v506_v3 = vld [vmem:[#allocation5 + $0x28] sm:$0xff]  ;;  %v505_v7 = vld [vmem:[#allocation5 + $0x20] sm:$0xff]  ;;  %s654_s28 = smov 16   ;;  %s655_s29 = smov 32   ;;  %vm97_vm0 = vcmask 130048  }
  0x10   :  { %174 = vmatpush.bf16.msra.mxu0 %v508_v1  ;;  %v504_v12 = vld [vmem:[#allocation5 + $0x18] sm:$0xff]  ;;  %v503_v22 = vld [vmem:[#allocation5 + $0x10] sm:$0xff]  ;;  %v502_v23 = vld [vmem:[#allocation5 + $0x8] sm:$0xff]  ;;  %vm99_vm1 = vcmask 261120   ;;  %vm101_vm2 = vcmask 392192   ;;  %vm103_vm3 = vcmask 523264  }
  0x11   :  { %v501_v24 = vld [vmem:[#allocation5] sm:$0xff]  ;;  %vm105_vm4 = vcmask 654336   ;;  %vm107_vm5 = vcmask 785408   ;;  %v524_v36 = vld [vmem:[#allocation7 + $0x78] sm:$0xff]  ;;  %v523_v38 = vld [vmem:[#allocation7 + $0x70] sm:$0xff]  ;;  %s656_s30 = smov 96  }
  0x12   :  { %vm431_vm6 = vmpackc.low %vm107_vm5, %vm107_vm5  ;;  %v516_v37 = vld [vmem:[#allocation7 + $0x38] sm:$0xff]  ;;  %367 = vmatpush.bf16.msra.mxu2 %v524_v36  ;;  %v515_v39 = vld [vmem:[#allocation7 + $0x30] sm:$0xff]  ;;  %s657_s4 = smov [#allocation8]   ;;  %s388_s8 = sshll.u32 %s711_s3, 4  ;;  %s389_s8 = int_to_ptr.hbm [resolvable:$true] %s388_s8 }
  0x13   :  { %354 = vmatpush.bf16.msra.mxu1 %v516_v37  ;;  %v522_v40 = vld [vmem:[#allocation7 + $0x68] sm:$0xff]  ;;  %v521_v42 = vld [vmem:[#allocation7 + $0x60] sm:$0xff]  ;;  %v520_v43 = vld [vmem:[#allocation7 + $0x58] sm:$0xff]  ;;  %s386_s5 = sshll.u32 %s657_s4, 4  ;;  %s387_s5 = int_to_ptr.vmem [resolvable:$true] %s386_s5 }
  0x14   :  { %175 = vmatpush.bf16.msra.mxu0 %v507_v2  ;;  %v519_v48 = vld [vmem:[#allocation7 + $0x50] sm:$0xff]  ;;  %v518_v53 = vld [vmem:[#allocation7 + $0x48] sm:$0xff]  ;;  %v517_v1 = vld [vmem:[#allocation7 + $0x40] sm:$0xff] }
  0x15   :  { %v542_v4 = vpop.eup %541  ;;  %v514_v0 = vld [vmem:[#allocation7 + $0x28] sm:$0xff]  ;;  %v513_v2 = vld [vmem:[#allocation7 + $0x20] sm:$0xff]  ;;  %vm498_vm7 = vmpackc.low %vm103_vm3, %vm103_vm3 }
  0x16   :  { %v62_v5 = vmul.f32 0.5, %v542_v4  ;;  %368 = vmatpush.bf16.msra.mxu2 %v523_v38  ;;  %v511_v4 = vld [vmem:[#allocation7 + $0x10] sm:$0xff] }
  0x17   :  { %355 = vmatpush.bf16.msra.mxu1 %v515_v39 }
  0x18   :  { %v63_v6 = vadd.f32 0.5, %v62_v5  ;;  %176 = vmatpush.bf16.msra.mxu0 %v506_v3  ;;  %v512_v3 = vld [vmem:[#allocation7 + $0x18] sm:$0xff]  ;;  %v510_v5 = vld [vmem:[#allocation7 + $0x8] sm:$0xff] }
  0x1a   :  { %v64_v8 = vsub.f32 1.0, %v63_v6  ;;  %v65_v9 = vmul.f32 %v63_v6, %v63_v6  ;;  %369 = vmatpush.bf16.msra.mxu2 %v522_v40 }
  0x1b   :  { %356 = vmatpush.bf16.msra.mxu1 %v514_v0 }
  0x1c   :  { %v70_v10 = vmul.f32 %v64_v8, %v64_v8  ;;  %v66_v11 = vmul.f32 %v65_v9, %v63_v6  ;;  %177 = vmatpush.bf16.msra.mxu0 %v505_v7 }
  0x1e   :  { %v72_v13 = vmul.f32 %v70_v10, %v64_v8  ;;  %v71_v14 = vmul.f32 %v70_v10, %v66_v11  ;;  %v67_v15 = vmul.f32 %v66_v11, %v63_v6  ;;  %370 = vmatpush.bf16.msra.mxu2 %v521_v42 }
  0x1f   :  { %357 = vmatpush.bf16.msra.mxu1 %v513_v2 }
  0x20   :  { %v74_v16 = vmul.f32 %v72_v13, %v64_v8  ;;  %86 = vrot.lane.b32.xlu1 %v71_v14, %s652_s0  ;;  %v68_v17 = vmul.f32 %v67_v15, %v63_v6  ;;  %178 = vmatpush.bf16.msra.mxu0 %v504_v12  ;;  %v69_v20 = vmul.f32 %v67_v15, %v64_v8 }
  0x21   :  { %v73_v21 = vmul.f32 %v72_v13, %v65_v9 }
  0x22   :  { %v75_v18 = vmul.f32 %v74_v16, %v63_v6  ;;  %v76_v19 = vmul.f32 %v74_v16, %v64_v8  ;;  %94 = vrot.lane.b32.xlu2 %v68_v17, %s653_s2  ;;  %371 = vmatpush.bf16.msra.mxu2 %v520_v43  ;;  %v509_v6 = vld [vmem:[#allocation7] sm:$0xff] }
  0x23   :  { %358 = vmatpush.bf16.msra.mxu1 %v512_v3 }
  0x24   :  { %78 = vrot.lane.b32.xlu0 %v75_v18, %s654_s28  ;;  %179 = vmatpush.bf16.msra.mxu0 %v503_v22 }
  0x26   :  { %372 = vmatpush.bf16.msra.mxu2 %v519_v48 }
  0x27   :  { %359 = vmatpush.bf16.msra.mxu1 %v511_v4 }
  0x28   :  { %90 = vrot.lane.b32.xlu1 %v69_v20, %s648_s20  ;;  %180 = vmatpush.bf16.msra.mxu0 %v502_v23 }
  0x2a   :  { %373 = vmatpush.bf16.msra.mxu2 %v518_v53 }
  0x2b   :  { %360 = vmatpush.bf16.msra.mxu1 %v510_v5 }
  0x2c   :  { %82 = vrot.lane.b32.xlu0 %v73_v21, %s655_s29  ;;  %181 = vmatpush.bf16.msra.mxu0 %v501_v24 }
  0x2e   :  { %374 = vmatpush.bf16.msra.mxu2 %v517_v1 }
  0x2f   :  { %361 = vmatpush.bf16.msra.mxu1 %v509_v6 }
  0x7c   :  { %v95_v31 = vpop.permute.xlu2 %94 }
  0x92   :  { %v87_v25 = vpop.permute.xlu1 %86 }
  0x96   :  { %v79_v26 = vpop.permute.xlu0 %78 }
  0x97   :  { %v98_v27 = vsel %vm97_vm0, %v76_v19, %v79_v26 }
  0x9a   :  { %v91_v29 = vpop.permute.xlu1 %90 }
  0x9e   :  { %v83_v28 = vpop.permute.xlu0 %82 }
  0x9f   :  { %v100_v30 = vsel %vm99_vm1, %v98_v27, %v83_v28 }
  0xa0   :  { %v102_v32 = vsel %vm101_vm2, %v100_v30, %v87_v25 }
  0xa1   :  { %v104_v33 = vsel %vm103_vm3, %v102_v32, %v91_v29 }
  0xa2   :  { %v106_v34 = vsel %vm105_vm4, %v104_v33, %v95_v31 }
  0xa3   :  { %v432_v35 = vpack.c.bf16 %v106_v34, %v106_v34 }
  0xa5   :  { %433 = vmatmul.msk.bf16.vlgmr.msra.gmra.mxu0 %vm431_vm6, %v432_v35 }
 0x122   :  { %v183_v41 = vpop.f32.mrf.mxu0 }
 0x123   :  { %543 = vtanh.f32 %v183_v41 }
 0x129   :  { %v544_v44 = vpop.eup %543 }
 0x12a   :  { %v188_v45 = vmul.f32 0.5, %v544_v44  ;;  %v185_v46 = vpop.f32.mrf.mxu0 }
 0x12c   :  { %v189_v47 = vadd.f32 0.5, %v188_v45 }
 0x12e   :  { %v190_v49 = vsub.f32 1.0, %v189_v47  ;;  %v191_v50 = vmul.f32 %v189_v47, %v189_v47 }
 0x130   :  { %v192_v51 = vmul.f32 %v191_v50, %v189_v47  ;;  %v196_v52 = vmul.f32 %v190_v49, %v190_v49 }
 0x132   :  { %v197_v54 = vmul.f32 %v196_v52, %v192_v51  ;;  %v198_v55 = vmul.f32 %v196_v52, %v190_v49  ;;  %v193_v56 = vmul.f32 %v192_v51, %v189_v47 }
 0x134   :  { %212 = vrot.lane.b32.xlu1 %v197_v54, %s656_s30  ;;  %v199_v57 = vmul.f32 %v198_v55, %v191_v50  ;;  %v200_v58 = vmul.f32 %v198_v55, %v190_v49  ;;  %v195_v59 = vmul.f32 %v193_v56, %v190_v49  ;;  %v194_v61 = vmul.f32 %v193_v56, %v189_v47 }
 0x136   :  { %v202_v60 = vmul.f32 %v200_v58, %v190_v49  ;;  %208 = vrot.lane.b32.xlu0 %v199_v57, %s648_s20  ;;  %v201_v62 = vmul.f32 %v200_v58, %v189_v47 }
 0x138   :  { %v536_v63 = vpack.i.bf16 %v201_v62, %v194_v61 }
 0x13a   :  { %537 = vrot.lane.b32.xlu2 %v536_v63, %s655_s29 }
 0x194   :  { %v538_v7 = vpop.permute.xlu2 %537 }
 0x195   :  { %v539_v8 = vunpack.i.l.bf16 %v538_v7  ;;  %v540_v11 = vunpack.i.h.bf16 %v538_v7 }
 0x197   :  { %v222_v9 = vsel %vm99_vm1, %v195_v59, %v539_v8  ;;  %v219_v12 = vsel %vm99_vm1, %v202_v60, %v540_v11 }
 0x198   :  { %v499_v10 = vpack.c.bf16 %v222_v9, %v222_v9 }
 0x19a   :  { %500 = vmatmul.msk.bf16.vlgmr.msra.gmra.mxu2 %vm498_vm7, %v499_v10 }
 0x1a6   :  { %v213_v14 = vpop.permute.xlu1 %212 }
 0x1a8   :  { %v209_v13 = vpop.permute.xlu0 %208 }
 0x1a9   :  { %v220_v15 = vsel %vm103_vm3, %v219_v12, %v209_v13 }
 0x1aa   :  { %v221_v16 = vsel %vm107_vm5, %v220_v15, %v213_v14 }
 0x1ab   :  { %v224_v17 = vpack.c.bf16 %v221_v16, %v221_v16 }
 0x1ad   :  { %362 = vmatmul.bf16.vlgmr.msra.gmra.mxu1 %v224_v17 }
 0x21d   :  { %v376_v18 = vpop.f32.mrf.mxu2 }
 0x225   :  { %v378_v19 = vpop.f32.mrf.mxu2 }
 0x22a   :  { %v363_v20 = vpop.f32.mrf.mxu1 }
 0x22b   :  { %v377_v21 = vadd.f32 %v376_v18, %v363_v20 }
 0x22d   :  { %380 = vst [vmem:[#allocation8] sm:$0xff] %v377_v21 }
 0x22e   :  { %391 = dma.vmem_to_hbm [thread:$0]  %s387_s5, 128, %s389_s8, [#allocation4]  }
 0x232   :  { %v365_v22 = vpop.f32.mrf.mxu1 }
 0x233   :  { %645 = dma.done.wait [#allocation4], 128  }
 0x234   :  { %646 = vsyncadd [#allocation4], 4294967168 }
 0x235   :  { %396 = vsyncpa [#allocation3], 1 }
 0x236   :  { %397 = vsyncpa [#allocation6], 1 }
 0x237   :  { %398 = vsyncpa [#allocation4], 1 }

</bundles_post_ra>
